<compile_context>
chip_gen: v5e
topology: v5e:2x2
jax: 0.10.0
libtpu: 0.0.40
codegen_flags: <defaults>
</compile_context>

<pallas_src>
import jax
import jax.numpy as jnp
from jax.experimental import pallas as pl
from jax.experimental.pallas import tpu as pltpu


def residual_conv1x1_kernel(x_ref, w_ref, b_ref, o_ref):
    # x_ref: (tm, C) bf16 activation tile (flattened channels-last rows)
    # w_ref: (C, C)  bf16 1x1-conv weight, stored (C_in, C_out)
    # b_ref: (1, C)  f32 bias
    x = x_ref[...]
    y = jnp.dot(x, w_ref[...], preferred_element_type=jnp.float32)   # MXU, f32 acc
    # Residual + bias in f32 on the VPU (rides free under the tile DMA).
    o_ref[...] = (y + b_ref[...] + x.astype(jnp.float32)).astype(o_ref.dtype)


def _vmem_capacity_bytes():
    try:
        return int(pltpu.get_tpu_info().vmem_capacity_bytes)
    except Exception:
        return 64 << 20     # conservative fallback (v7x per-TC VMEM)


def _choose_tile_m(M, C, act_bytes):
    """Largest row tile tm that (a) divides M exactly (no host pad/slice),
    (b) keeps double-buffered x+out tiles in a generation-aware VMEM budget,
    and (c) prefers an even grid count (v7x: 2 TensorCores) when that costs
    at most a 2x smaller tile."""
    vmem_cap = _vmem_capacity_bytes()
    tile_budget = min((vmem_cap * 3) // 8, 48 << 20)   # v7x ~24 MiB, v5e/v6e 48 MiB
    bytes_per_row = 2 * 2 * C * act_bytes              # (x + out) * double-buffer
    cap = max(8, min(16384, ((tile_budget // bytes_per_row) // 8) * 8))

    if M % 8 != 0:
        # block_shape == full array dim is always legal; single grid step.
        return M

    best, best_even = 8, None
    for tm in range(8, min(cap, M) + 1, 8):
        if M % tm == 0:
            best = tm
            if (M // tm) % 2 == 0:
                best_even = tm
    if best_even is not None and 2 * best_even >= best:
        return best_even
    return best


def prepare_residual_conv1x1_params(w, b, compute_dtype=jnp.bfloat16):
    """Hoisted parameter prep: do once at load time, not per forward call."""
    return w.astype(compute_dtype), b.reshape(1, -1).astype(jnp.float32)


def residual_1x1conv_nhwc(x_nhwc, w_cd, b_1c, *, tm=None):
    """Residual(Conv1x1)(x) = conv1x1(x) + x for channels-last (NHWC) input.

    x_nhwc: (N, H, W, C) activations (bf16 recommended; kernel I/O runs in the
            activation dtype).
    w_cd:   (C_in, C_out) weight, b_1c: (1, C) f32 bias -- both already
            prepared via prepare_residual_conv1x1_params().
    """
    N, H, W, C = x_nhwc.shape
    M = N * H * W
    act_bytes = jnp.dtype(x_nhwc.dtype).itemsize

    if tm is None:
        tm = _choose_tile_m(M, C, act_bytes)
    assert M % tm == 0, "tm must divide N*H*W (pad/slice path removed by design)"
    grid_m = M // tm

    # NHWC -> (M, C) is a free reshape (no transpose, no extra HBM traffic).
    x_flat = x_nhwc.reshape(M, C)

    w_bytes = jnp.dtype(w_cd.dtype).itemsize
    vmem_needed = (2 * 2 * tm * C * act_bytes       # x + out tiles, double-buffered
                   + 2 * C * C * w_bytes            # weight (constant index -> DMA'd once)
                   + 2 * 8 * C * 4)                 # bias, sublane-padded
    vmem_cap = _vmem_capacity_bytes()
    vmem_limit = int(min((vmem_cap * 3) // 4, max(32 << 20, (vmem_needed * 3) // 2)))

    out_flat = pl.pallas_call(
        residual_conv1x1_kernel,
        out_shape=jax.ShapeDtypeStruct((M, C), x_nhwc.dtype),
        grid_spec=pltpu.PrefetchScalarGridSpec(
            num_scalar_prefetch=0,
            grid=(grid_m,),
            in_specs=[
                pl.BlockSpec((tm, C), lambda i: (i, 0)),   # activation tile
                pl.BlockSpec((C, C), lambda i: (0, 0)),    # resident weight
                pl.BlockSpec((1, C), lambda i: (0, 0)),    # resident bias
                # TODO(synk): mark weight/bias pipeline_mode=pl.Buffered(1) once
                # pinned to a jax rev that accepts 1-deep pipelines; with a
                # constant index_map they are only DMA'd once either way.
            ],
            out_specs=pl.BlockSpec((tm, C), lambda i: (i, 0)),
        ),
        compiler_params=pltpu.CompilerParams(
            dimension_semantics=("parallel",),
            vmem_limit_bytes=vmem_limit,
        ),
    )(x_flat, w_cd, b_1c)

    return out_flat.reshape(N, H, W, C)


if __name__ == "__main__":
    key = jax.random.PRNGKey(0)
    kx, kw, kb = jax.random.split(key, 3)

    # Channels-last Unet attention out-projection stage: lane-dense C = 128,
    # bf16 activations (the network's working dtype).
    N, H, W, C = 2, 16, 16, 128
    x = jax.random.normal(kx, (N, H, W, C), dtype=jnp.float32).astype(jnp.bfloat16)

    # Deterministic 1x1-conv parameters for `fn`, stored (C_in, C_out).
    w = jax.random.normal(kw, (C, C), dtype=jnp.float32) / jnp.sqrt(C)
    b = jax.random.normal(kb, (C,), dtype=jnp.float32) * 0.1
    w_bf, b_f32 = prepare_residual_conv1x1_params(w, b)   # hoisted out of forward

    out = jax.block_until_ready(residual_1x1conv_nhwc(x, w_bf, b_f32))

    # Reference (plain JAX, f32 math over the same bf16-cast operands):
    x32 = x.astype(jnp.float32).reshape(-1, C)
    w32 = w_bf.astype(jnp.float32)
    ref = (jnp.dot(x32, w32, precision=jax.lax.Precision.HIGHEST)
           + b[None, :] + x32).reshape(N, H, W, C)

    assert out.shape == (N, H, W, C) and out.dtype == jnp.bfloat16
    err = float(jnp.max(jnp.abs(out.astype(jnp.float32) - ref)))
    # Only the final bf16 output rounding separates kernel from f32 reference.
    assert jnp.allclose(out.astype(jnp.float32), ref, atol=3e-2, rtol=3e-2), err

    print("KERNEL_OK")
</pallas_src>

<mosaic_0001>
module attributes {stable_mosaic.version = 11 : i64} {
  func.func @residual_conv1x1_kernel(%arg0: i32, %arg1: memref<256x128xbf16, #tpu.memory_space<vmem>>, %arg2: memref<128x128xbf16, #tpu.memory_space<vmem>>, %arg3: memref<1x128xf32, #tpu.memory_space<vmem>>, %arg4: memref<256x128xbf16, #tpu.memory_space<vmem>>) attributes {dimension_semantics = [#tpu.dimension_semantics<parallel>], iteration_bounds = array<i64: 2>, scalar_prefetch = 0 : i64, scratch_operands = 0 : i64, tpu.core_type = #tpu.core_type<tc>, window_params = [{transform_indices = @transform_0, window_bounds = array<i64: 256, 128>}, {pipeline_mode = #tpu.pipeline_mode<synchronous>, transform_indices = @transform_1, window_bounds = array<i64: 128, 128>}, {pipeline_mode = #tpu.pipeline_mode<synchronous>, transform_indices = @transform_2, window_bounds = array<i64: 1, 128>}, {transform_indices = @transform_3, window_bounds = array<i64: 256, 128>}]} {
    %c0 = arith.constant 0 : index
    %c0_0 = arith.constant 0 : index
    %0 = vector.load %arg1[%c0, %c0_0] : memref<256x128xbf16, #tpu.memory_space<vmem>>, vector<256x128xbf16>
    %c0_1 = arith.constant 0 : index
    %c0_2 = arith.constant 0 : index
    %1 = vector.load %arg2[%c0_1, %c0_2] : memref<128x128xbf16, #tpu.memory_space<vmem>>, vector<128x128xbf16>
    %cst = arith.constant dense<0.000000e+00> : vector<256x128xf32>
    %2 = tpu.matmul %0, %1, %cst {dimension_numbers = #tpu.dot_dimension_numbers<[1], [0], [0], [1], [0, 0, 1, 1], [], []>} : vector<256x128xbf16>, vector<128x128xbf16>, vector<256x128xf32> -> vector<256x128xf32>
    %c0_3 = arith.constant 0 : index
    %c0_4 = arith.constant 0 : index
    %3 = vector.load %arg3[%c0_3, %c0_4] : memref<1x128xf32, #tpu.memory_space<vmem>>, vector<1x128xf32>
    %4 = vector.broadcast %3 : vector<1x128xf32> to vector<256x128xf32>
    %5 = arith.addf %2, %4 : vector<256x128xf32>
    %6 = arith.extf %0 : vector<256x128xbf16> to vector<256x128xf32>
    %7 = arith.addf %5, %6 : vector<256x128xf32>
    %8 = arith.truncf %7 : vector<256x128xf32> to vector<256x128xbf16>
    %c0_5 = arith.constant 0 : index
    %c0_6 = arith.constant 0 : index
    %9 = vector.load %arg4[%c0_5, %c0_6] : memref<256x128xbf16, #tpu.memory_space<vmem>>, vector<256x128xbf16>
    tpu.vector_store %arg4[%c0_5, %c0_6], %8 {strides = array<i32>} : memref<256x128xbf16, #tpu.memory_space<vmem>>, vector<256x128xbf16>,
    return
  }
  func.func @transform_0(%arg0: i32) -> (i32, i32) {
    %c0_i32 = arith.constant 0 : i32
    %c0_i32_0 = arith.constant 0 : i32
    return %arg0, %c0_i32 : i32, i32
  }
  func.func @transform_1(%arg0: i32) -> (i32, i32) {
    %c0_i32 = arith.constant 0 : i32
    %c0_i32_0 = arith.constant 0 : i32
    %c0_i32_1 = arith.constant 0 : i32
    return %c0_i32, %c0_i32_0 : i32, i32
  }
  func.func @transform_2(%arg0: i32) -> (i32, i32) {
    %c0_i32 = arith.constant 0 : i32
    %c0_i32_0 = arith.constant 0 : i32
    %c0_i32_1 = arith.constant 0 : i32
    return %c0_i32, %c0_i32_0 : i32, i32
  }
  func.func @transform_3(%arg0: i32) -> (i32, i32) {
    %c0_i32 = arith.constant 0 : i32
    %c0_i32_0 = arith.constant 0 : i32
    return %arg0, %c0_i32 : i32, i32
  }
}

</mosaic_0001>

<bundles_post_ra>
// kernel: tpu_custom_call.1
= control target key start
LH: loop header
LB: loop body
LE: loop exit
PB: predicated region body
PF: predicated region fallthrough
CT: control target
= control target key end

     0   :  { %8 = vsyncpa [#allocation3], 0  ;;  %s1436_s0 = inlined_call_operand.hbm [shape: bf16[512,128], index: 0, kind: input, shape index: {}]   ;;  %s1437_s1 = inlined_call_operand.hbm [shape: bf16[128,128], index: 1, kind: input, shape index: {}]   ;;  %s1438_s2 = inlined_call_operand.vmem [shape: f32[1,128], index: 2, kind: input, shape index: {}]   ;;  %s1439_s3 = inlined_call_operand.hbm [shape: bf16[512,128], index: 3, kind: output, shape index: {}]  }
   0x1   :  { %10 = vsyncpa [#allocation3 + $0x1], 0 }
   0x2   :  { %11 = vsyncpa [#allocation6], 0 }
   0x3   :  { %12 = vsyncpa [#allocation4], 0 }
   0x4   :  { %14 = vsyncpa [#allocation4 + $0x1], 0  ;;  %s1198_s12 = smov 0   ;;  %s1200_s13 = smov 0  }
   0x5   :  { %s1202_s14 = smov 0   ;;  %s1204_s15 = smov 0  }
   0x6 LB: > { %s1219_s16 = sadd.s32 4294967295, %s1171_s15   ;;  %s722_s17 = sadd.s32 4294967294, %s1171_s15   ;;  %s1171_s15 = sphi %s1204_s15, %s1449_s15   ;;  %s1167_s14 = sphi %s1202_s14, %s1448_s14   ;;  %s1163_s13 = sphi %s1200_s13, %s1447_s13   ;;  %s1159_s12 = sphi %s1198_s12, %s1446_s12  }
   0x7   : > { %p40_p0 = scmp.ne.s32.totalorder %s1163_s13, %s1159_s12  ;;  %p41_p1 = scmp.eq.s32.totalorder %s1219_s16, 0 }
   0x8   : > { %p106_p2 = scmp.eq.s32.totalorder %s1219_s16, 1  ;;  %p112_p3 = scmp.eq.s32.totalorder %s722_s17, 1 }
   0x9   : > { %p1228_p4 = por %p41_p1, %p40_p0  ;;  %p723_p5 = scmp.ge.s32.totalorder %s1171_s15, 1 }
   0xa   : > { %p1233_p6 = por %p112_p3, %p40_p0  ;;  %p119_p7 = scmp.lt.s32.totalorder %s1171_s15, 3 }
   0xb   : > { %s130_s22 = sshll.u32 %s1437_s1, 4  ;;  %s1173_s24 = smov [#allocation5]   ;;  %s131_s22 = int_to_ptr.hbm [resolvable:$true] %s130_s22 }
   0xc   : > { %p1241_p8 = pnand %p723_p5, %p119_p7  ;;  %s132_s25 = sshll.u32 %s1173_s24, 4  ;;  %s133_s25 = int_to_ptr.vmem [resolvable:$true] %s132_s25 }
   0xd   : > { %s1251_s26 = sadd.s32 1, %s1171_s15   ;;  %s1174_s27 = smov 64  }
   0xe   : > { %p987_p9 = pneg %p1241_p8  ;;  %s1175_s28 = smov 4  }
   0xf   : > { %s24_s29 = ssub.s32 %s1171_s15, %s1251_s26  ;;  %s27_s30 = sadd.s32 1, %s1167_s14 }
  0x10   : > { %p988_p10 = pnand %p987_p9, %p41_p1  ;;  %p25_p12 = scmp.eq.s32.totalorder %s24_s29, 0 }
  0x11   : > { %p34_p13 = scmp.ne.s32.totalorder %s1167_s14, %s1163_s13  ;;  %p35_p0 = scmp.eq.s32.totalorder %s1171_s15, 0 }
  0x12   : > { %990 = dma.hbm_to_vmem [thread:$0]  (!%p988_p10), %s131_s22, 1024, %s133_s25, [#allocation6], %s1174_s27, %s1174_s27, %s1175_s28  }
  0x13   : > { %s1263_s4 = scalar_select %p25_p12, %s1167_s14, %s27_s30  }
  0x14   : > { %p1267_p3 = por %p106_p2, %p34_p13  ;;  %p1000_p5 = scmp.lt.s32.totalorder %s1171_s15, 2 }
  0x15   : > { %s149_s6 = sand.u32 1, %s1167_s14   ;;  %s834_s7 = sshll.u32 %s1171_s15, 7 }
  0x16   : > { %p36_p7 = por %p35_p0, %p34_p13  ;;  %s726_s8 = sshll.u32 %s149_s6, 7 }
  0x17   : > { %s158_s11 = scalar_lea.hbm %s1436_s0, %s834_s7  ;;  %s153_s20 = scalar_lea.vmem [#allocation2], %s726_s8 }
  0x18   : > { %s159_s17 = sshll.u32 %s158_s11, 4  ;;  %s161_s21 = sshll.u32 %s153_s20, 4  ;;  %s160_s17 = int_to_ptr.hbm [resolvable:$true] %s159_s17  ;;  %s162_s21 = int_to_ptr.vmem [resolvable:$true] %s161_s21 }
  0x19   : > { %p1277_p9 = pnand %p1000_p5, %p36_p7  ;;  %s150_s24 = scalar_lea.sflag [#allocation3], %s149_s6 }
  0x1a   : > { %s1071_s25 = sshra.s32 %s160_s17, 4  ;;  %s1078_s8 = scalar_lea.hbm %s1436_s0, 256  ;;  %s1072_s25 = int_to_ptr.hbm [resolvable:$true] %s1071_s25 }
  0x1b   : > { %s1073_s29 = scalar_lea.hbm %s1072_s25, 128  ;;  %p1075_p10 = pneg %p1277_p9 }
  0x1c   : > { %p1074_p2 = scmp.ne.s32.totalorder %s1072_s25, %s1073_s29  ;;  %p1079_p0 = scmp.lt.s32.totalorder %s1072_s25, %s1436_s0 }
  0x1d   : > { %p1080_p5 = scmp.lt.s32.totalorder %s1078_s8, %s1073_s29 }
  0x1e   : > { %p1076_p12 = pnand %p1075_p10, %p1074_p2 }
  0x1f   : > { %p1081_p7 = por %p1080_p5, %p1079_p0 }
  0x20   : > { %p1077_p13 = pneg %p1076_p12 }
  0x22   : > { %p1082_p11 = pnand %p1081_p7, %p1077_p13 }
  0x24   : > { %1085 = shalt.err (!%p1082_p11)
}
  0x25   : > { %994 = dma.hbm_to_vmem [thread:$0]  (!%p1277_p9), %s160_s17, 2048, %s162_s21, %s150_s24, %s1174_s27, %s1174_s27, %s1175_s28  }
  0x26   : > { %173 = sbr.rel (%p1241_p8) target bundleno = 278 (0x116), region = 32  ;;  %s1297_s6 = sand.u32 (!%p1241_p8), 1, %s1163_s13  }
  0x27   : > { %s730_s11 = sshll.u32 (!%p1241_p8), %s1297_s6, 7  ;;  %s176_s20 = scalar_lea.sflag (!%p1241_p8), [#allocation3], %s1297_s6 }
  0x28   : > { %s1303_s25 = scalar_lea.vmem (!%p1241_p8), [#allocation2], %s730_s11 }
  0x2b   : > { %1146 = dma.done.wait (%p1228_p4), %s176_s20, 2048  }
  0x2c   : > { %1148 = vsyncadd (%p1228_p4), %s176_s20, 4294965248 }
  0x2d   : > { %1150 = dma.done.wait (%p41_p1), [#allocation6], 1024  }
  0x2e   : > { %1152 = vsyncadd (%p41_p1), [#allocation6], 4294966272  ;;  %v858_v0 = vld [vmem:[#allocation5 + $0x38] sm:$0xff]  ;;  %v857_v1 = vld [vmem:[#allocation5 + $0x30] sm:$0xff]  ;;  %s1346_s27 = scalar_lea.vmem [#allocation7], %s730_s11  ;;  %s859_s28 = sshll.u32 %s1219_s16, 7 }
  0x2f   : > { %406 = vmatpush.bf16.msra.mxu0 %v858_v0  ;;  %955 = vmatpush.bf16.msra.mxu1 %v858_v0  ;;  %v856_v2 = vld [vmem:[#allocation5 + $0x28] sm:$0xff]  ;;  %v855_v3 = vld [vmem:[#allocation5 + $0x20] sm:$0xff]  ;;  %v854_v4 = vld [vmem:[#allocation5 + $0x18] sm:$0xff]  ;;  %s635_s22 = scalar_lea.hbm %s1439_s3, %s859_s28  ;;  %s636_s16 = sshll.u32 %s1346_s27, 4  ;;  %s637_s16 = int_to_ptr.vmem [resolvable:$true] %s636_s16 }
  0x30   : > { %956 = vmatpush.bf16.msra.mxu2 %v858_v0  ;;  %957 = vmatpush.bf16.msra.mxu3 %v858_v0  ;;  %v853_v5 = vld [vmem:[#allocation5 + $0x10] sm:$0xff]  ;;  %v852_v6 = vld [vmem:[#allocation5 + $0x8] sm:$0xff]  ;;  %v851_v7 = vld [vmem:[#allocation5] sm:$0xff]  ;;  %s638_s24 = sshll.u32 %s635_s22, 4  ;;  %s624_s29 = scalar_lea.sflag [#allocation4], %s1297_s6  ;;  %s639_s24 = int_to_ptr.hbm [resolvable:$true] %s638_s24 }
  0x31   : > { %v835_v8 = vld [vmem:[%s1303_s25] sm:$0xff]  ;;  %v836_v12 = vld [vmem:[%s1303_s25 + $0x8] sm:$0xff]  ;;  %v837_v16 = vld [vmem:[%s1303_s25 + $0x10] sm:$0xff]  ;;  %s1115_s30 = sshra.s32 %s639_s24, 4  ;;  %s1121_s10 = scalar_lea.hbm %s1439_s3, 256  ;;  %s1116_s30 = int_to_ptr.hbm [resolvable:$true] %s1115_s30 }
  0x32   : > { %v839_v9 = vld [vmem:[%s1303_s25 + $0x20] sm:$0xff]  ;;  %v840_v13 = vld [vmem:[%s1303_s25 + $0x28] sm:$0xff]  ;;  %v841_v17 = vld [vmem:[%s1303_s25 + $0x30] sm:$0xff]  ;;  %s1117_s7 = scalar_lea.hbm %s1116_s30, 128  ;;  %p1122_p11 = scmp.lt.s32.totalorder %s1116_s30, %s1439_s3 }
  0x33   : > { %407 = vmatpush.bf16.msra.mxu0 %v857_v1  ;;  %958 = vmatpush.bf16.msra.mxu1 %v857_v1  ;;  %v843_v10 = vld [vmem:[%s1303_s25 + $0x40] sm:$0xff]  ;;  %v844_v14 = vld [vmem:[%s1303_s25 + $0x48] sm:$0xff]  ;;  %v845_v18 = vld [vmem:[%s1303_s25 + $0x50] sm:$0xff]  ;;  %p1118_p1 = scmp.ne.s32.totalorder %s1116_s30, %s1117_s7  ;;  %p1123_p9 = scmp.lt.s32.totalorder %s1121_s10, %s1117_s7 }
  0x34   : > { %959 = vmatpush.bf16.msra.mxu2 %v857_v1  ;;  %960 = vmatpush.bf16.msra.mxu3 %v857_v1  ;;  %v847_v11 = vld [vmem:[%s1303_s25 + $0x60] sm:$0xff]  ;;  %v848_v15 = vld [vmem:[%s1303_s25 + $0x68] sm:$0xff]  ;;  %v849_v19 = vld [vmem:[%s1303_s25 + $0x70] sm:$0xff] }
  0x35   : > { %v838_v20 = vld [vmem:[%s1303_s25 + $0x18] sm:$0xff]  ;;  %v210_v26 = vld [vmem:[%s1303_s25] sm:$0xff]   ;;  %v212_v1 = vld [vmem:[%s1303_s25 + $0x8] sm:$0xff]   ;;  %p1119_p4 = pnand %p1118_p1, %p1267_p3  ;;  %p1124_p2 = por %p1123_p9, %p1122_p11 }
  0x36   : > { %v842_v21 = vld [vmem:[%s1303_s25 + $0x38] sm:$0xff]  ;;  %v1333_v27 = vld [vmem:[%s1438_s2] ss:$0 sm:$0xff]  ;;  %v495_v29 = vunpack.c.l.bf16 %v210_v26  ;;  %v496_v35 = vunpack.c.h.bf16 %v210_v26 }
  0x37   : > { %408 = vmatpush.bf16.msra.mxu0 %v856_v2  ;;  %961 = vmatpush.bf16.msra.mxu1 %v856_v2  ;;  %v846_v22 = vld [vmem:[%s1303_s25 + $0x58] sm:$0xff]  ;;  %v218_v28 = vld [vmem:[%s1303_s25 + $0x20] sm:$0xff]   ;;  %p1120_p8 = pneg %p1119_p4 }
  0x38   : > { %962 = vmatpush.bf16.msra.mxu2 %v856_v2  ;;  %963 = vmatpush.bf16.msra.mxu3 %v856_v2  ;;  %v850_v23 = vld [vmem:[%s1303_s25 + $0x78] sm:$0xff]  ;;  %v503_v30 = vunpack.c.l.bf16 %v218_v28  ;;  %v504_v36 = vunpack.c.h.bf16 %v218_v28  ;;  %v226_v41 = vld [vmem:[%s1303_s25 + $0x40] sm:$0xff]   ;;  %v220_v2 = vld [vmem:[%s1303_s25 + $0x28] sm:$0xff]  }
  0x39   : > { %v234_v42 = vld [vmem:[%s1303_s25 + $0x60] sm:$0xff]   ;;  %v511_v47 = vunpack.c.l.bf16 %v226_v41  ;;  %v512_v53 = vunpack.c.h.bf16 %v226_v41  ;;  %p1125_p10 = pnand %p1124_p2, %p1120_p8 }
  0x3a   : > { %v519_v48 = vunpack.c.l.bf16 %v234_v42  ;;  %v520_v54 = vunpack.c.h.bf16 %v234_v42  ;;  %v214_v42 = vld [vmem:[%s1303_s25 + $0x10] sm:$0xff]  }
  0x3b   : > { %409 = vmatpush.bf16.msra.mxu0 %v855_v3  ;;  %964 = vmatpush.bf16.msra.mxu1 %v855_v3 }
  0x3c   : > { %965 = vmatpush.bf16.msra.mxu2 %v855_v3  ;;  %966 = vmatpush.bf16.msra.mxu3 %v855_v3 }
  0x3f   : > { %410 = vmatpush.bf16.msra.mxu0 %v854_v4  ;;  %967 = vmatpush.bf16.msra.mxu1 %v854_v4 }
  0x40   : > { %968 = vmatpush.bf16.msra.mxu2 %v854_v4  ;;  %969 = vmatpush.bf16.msra.mxu3 %v854_v4 }
  0x43   : > { %411 = vmatpush.bf16.msra.mxu0 %v853_v5  ;;  %970 = vmatpush.bf16.msra.mxu1 %v853_v5 }
  0x44   : > { %971 = vmatpush.bf16.msra.mxu2 %v853_v5  ;;  %972 = vmatpush.bf16.msra.mxu3 %v853_v5  ;;  %v497_v5 = vunpack.c.l.bf16 %v212_v1 }
  0x47   : > { %412 = vmatpush.bf16.msra.mxu0 %v852_v6  ;;  %973 = vmatpush.bf16.msra.mxu1 %v852_v6 }
  0x48   : > { %974 = vmatpush.bf16.msra.mxu2 %v852_v6  ;;  %975 = vmatpush.bf16.msra.mxu3 %v852_v6  ;;  %v505_v6 = vunpack.c.l.bf16 %v220_v2 }
  0x4b   : > { %413 = vmatpush.bf16.msra.mxu0 %v851_v7  ;;  %976 = vmatpush.bf16.msra.mxu1 %v851_v7 }
  0x4c   : > { %977 = vmatpush.bf16.msra.mxu2 %v851_v7  ;;  %978 = vmatpush.bf16.msra.mxu3 %v851_v7 }
  0x4e   : > { %414 = vmatmul.bf16.vlgmr.msra.gmra.mxu0 %v835_v8  ;;  %434 = vmatmul.bf16.vlgmr.msra.gmra.mxu1 %v839_v9 }
  0x4f   : > { %454 = vmatmul.bf16.vlgmr.msra.gmra.mxu2 %v843_v10  ;;  %474 = vmatmul.bf16.vlgmr.msra.gmra.mxu3 %v847_v11  ;;  %v498_v11 = vunpack.c.h.bf16 %v212_v1 }
  0x5e   : > { %419 = vmatmul.bf16.gmra.mxu0 %v836_v12  ;;  %439 = vmatmul.bf16.gmra.mxu1 %v840_v13  ;;  %v506_v12 = vunpack.c.h.bf16 %v220_v2 }
  0x5f   : > { %459 = vmatmul.bf16.gmra.mxu2 %v844_v14  ;;  %479 = vmatmul.bf16.gmra.mxu3 %v848_v15 }
  0x6e   : > { %424 = vmatmul.bf16.gmra.mxu0 %v837_v16  ;;  %444 = vmatmul.bf16.gmra.mxu1 %v841_v17  ;;  %v228_v17 = vld [vmem:[%s1303_s25 + $0x48] sm:$0xff]  }
  0x6f   : > { %464 = vmatmul.bf16.gmra.mxu2 %v845_v18  ;;  %484 = vmatmul.bf16.gmra.mxu3 %v849_v19  ;;  %v236_v18 = vld [vmem:[%s1303_s25 + $0x68] sm:$0xff]  }
  0x7e   : > { %429 = vmatmul.bf16.gmra.mxu0 %v838_v20  ;;  %449 = vmatmul.bf16.gmra.mxu1 %v842_v21 }
  0x7f   : > { %469 = vmatmul.bf16.gmra.mxu2 %v846_v22  ;;  %489 = vmatmul.bf16.gmra.mxu3 %v850_v23  ;;  %v513_v23 = vunpack.c.l.bf16 %v228_v17 }
  0xcb   : > { %v415_v24 = vpop.f32.mrf.mxu0  ;;  %v435_v25 = vpop.f32.mrf.mxu1 }
  0xcc   : > { %v416_v31 = vadd.f32 %v1333_v27, %v415_v24  ;;  %v436_v32 = vadd.f32 %v1333_v27, %v435_v25  ;;  %v521_v24 = vunpack.c.l.bf16 %v236_v18 }
  0xce   : > { %v527_v43 = vadd.f32 %v495_v29, %v416_v31  ;;  %v535_v44 = vadd.f32 %v503_v30, %v436_v32  ;;  %v514_v30 = vunpack.c.h.bf16 %v228_v17  ;;  %v522_v31 = vunpack.c.h.bf16 %v236_v18  ;;  %v216_v18 = vld [vmem:[%s1303_s25 + $0x18] sm:$0xff]  }
  0xd2   : > { %v455_v33 = vpop.f32.mrf.mxu2  ;;  %v475_v34 = vpop.f32.mrf.mxu3 }
  0xd3   : > { %v417_v37 = vpop.f32.mrf.mxu0  ;;  %v437_v38 = vpop.f32.mrf.mxu1  ;;  %v456_v51 = vadd.f32 %v1333_v27, %v455_v33  ;;  %v476_v52 = vadd.f32 %v1333_v27, %v475_v34 }
  0xd4   : > { %v418_v39 = vadd.f32 %v1333_v27, %v417_v37  ;;  %v438_v40 = vadd.f32 %v1333_v27, %v437_v38 }
  0xd5   : > { %v543_v61 = vadd.f32 %v511_v47, %v456_v51  ;;  %v551_v62 = vadd.f32 %v519_v48, %v476_v52  ;;  %v500_v52 = vunpack.c.h.bf16 %v214_v42 }
  0xd6   : > { %v528_v45 = vadd.f32 %v496_v35, %v418_v39  ;;  %v536_v46 = vadd.f32 %v504_v36, %v438_v40 }
  0xd8   : > { %v863_v49 = vpack.c.bf16 %v528_v45, %v527_v43  ;;  %v883_v50 = vpack.c.bf16 %v536_v46, %v535_v44  ;;  %v222_v43 = vld [vmem:[%s1303_s25 + $0x30] sm:$0xff]   ;;  %v499_v46 = vunpack.c.l.bf16 %v214_v42 }
  0xd9   : > { %v507_v47 = vunpack.c.l.bf16 %v222_v43 }
  0xda   : > { %864 = vst [vmem:[%s1346_s27] sm:$0xff] %v863_v49   ;;  %v457_v55 = vpop.f32.mrf.mxu2  ;;  %v477_v56 = vpop.f32.mrf.mxu3 }
  0xdb   : > { %943 = vst [vmem:[%s1346_s27 + $0x20] sm:$0xff] %v883_v50   ;;  %v458_v57 = vadd.f32 %v1333_v27, %v457_v55  ;;  %v478_v58 = vadd.f32 %v1333_v27, %v477_v56  ;;  %v420_v59 = vpop.f32.mrf.mxu0  ;;  %v440_v60 = vpop.f32.mrf.mxu1 }
  0xdc   : > { %v421_v7 = vadd.f32 %v1333_v27, %v420_v59  ;;  %v441_v8 = vadd.f32 %v1333_v27, %v440_v60  ;;  %v238_v59 = vld [vmem:[%s1303_s25 + $0x70] sm:$0xff]  }
  0xdd   : > { %v544_v63 = vadd.f32 %v512_v53, %v458_v57  ;;  %v552_v0 = vadd.f32 %v520_v54, %v478_v58  ;;  %v508_v53 = vunpack.c.h.bf16 %v222_v43  ;;  %v230_v58 = vld [vmem:[%s1303_s25 + $0x50] sm:$0xff]   ;;  %v523_v1 = vunpack.c.l.bf16 %v238_v59 }
  0xde   : > { %v529_v19 = vadd.f32 %v497_v5, %v421_v7  ;;  %v537_v20 = vadd.f32 %v505_v6, %v441_v8  ;;  %v516_v6 = vunpack.c.h.bf16 %v230_v58  ;;  %v524_v7 = vunpack.c.h.bf16 %v238_v59 }
  0xdf   : > { %v903_v3 = vpack.c.bf16 %v544_v63, %v543_v61  ;;  %v923_v4 = vpack.c.bf16 %v552_v0, %v551_v62  ;;  %v515_v0 = vunpack.c.l.bf16 %v230_v58 }
  0xe1   : > { %947 = vst [vmem:[%s1346_s27 + $0x40] sm:$0xff] %v903_v3  }
  0xe2   : > { %951 = vst [vmem:[%s1346_s27 + $0x60] sm:$0xff] %v923_v4   ;;  %v460_v9 = vpop.f32.mrf.mxu2  ;;  %v480_v10 = vpop.f32.mrf.mxu3 }
  0xe3   : > { %v422_v13 = vpop.f32.mrf.mxu0  ;;  %v442_v14 = vpop.f32.mrf.mxu1  ;;  %v461_v28 = vadd.f32 %v1333_v27, %v460_v9  ;;  %v481_v29 = vadd.f32 %v1333_v27, %v480_v10 }
  0xe4   : > { %v423_v15 = vadd.f32 %v1333_v27, %v422_v13  ;;  %v443_v16 = vadd.f32 %v1333_v27, %v442_v14 }
  0xe5   : > { %v545_v38 = vadd.f32 %v513_v23, %v461_v28  ;;  %v553_v39 = vadd.f32 %v521_v24, %v481_v29  ;;  %v502_v29 = vunpack.c.h.bf16 %v216_v18 }
  0xe6   : > { %v530_v21 = vadd.f32 %v498_v11, %v423_v15  ;;  %v538_v22 = vadd.f32 %v506_v12, %v443_v16 }
  0xe8   : > { %v868_v25 = vpack.c.bf16 %v530_v21, %v529_v19  ;;  %v888_v26 = vpack.c.bf16 %v538_v22, %v537_v20  ;;  %v224_v19 = vld [vmem:[%s1303_s25 + $0x38] sm:$0xff]   ;;  %v501_v22 = vunpack.c.l.bf16 %v216_v18 }
  0xe9   : > { %v509_v23 = vunpack.c.l.bf16 %v224_v19 }
  0xea   : > { %940 = vst [vmem:[%s1346_s27 + $0x8] sm:$0xff] %v868_v25   ;;  %v462_v32 = vpop.f32.mrf.mxu2  ;;  %v482_v33 = vpop.f32.mrf.mxu3 }
  0xeb   : > { %944 = vst [vmem:[%s1346_s27 + $0x28] sm:$0xff] %v888_v26   ;;  %v463_v34 = vadd.f32 %v1333_v27, %v462_v32  ;;  %v483_v35 = vadd.f32 %v1333_v27, %v482_v33  ;;  %v425_v36 = vpop.f32.mrf.mxu0  ;;  %v445_v37 = vpop.f32.mrf.mxu1 }
  0xec   : > { %v426_v48 = vadd.f32 %v1333_v27, %v425_v36  ;;  %v446_v49 = vadd.f32 %v1333_v27, %v445_v37  ;;  %v240_v36 = vld [vmem:[%s1303_s25 + $0x78] sm:$0xff]  }
  0xed   : > { %v546_v40 = vadd.f32 %v514_v30, %v463_v34  ;;  %v554_v41 = vadd.f32 %v522_v31, %v483_v35  ;;  %v510_v30 = vunpack.c.h.bf16 %v224_v19  ;;  %v232_v35 = vld [vmem:[%s1303_s25 + $0x58] sm:$0xff]   ;;  %v525_v42 = vunpack.c.l.bf16 %v240_v36 }
  0xee   : > { %v531_v60 = vadd.f32 %v499_v46, %v426_v48  ;;  %v539_v61 = vadd.f32 %v507_v47, %v446_v49  ;;  %v518_v47 = vunpack.c.h.bf16 %v232_v35  ;;  %v526_v48 = vunpack.c.h.bf16 %v240_v36 }
  0xef   : > { %v908_v44 = vpack.c.bf16 %v546_v40, %v545_v38  ;;  %v928_v45 = vpack.c.bf16 %v554_v41, %v553_v39  ;;  %v517_v41 = vunpack.c.l.bf16 %v232_v35 }
  0xf1   : > { %948 = vst [vmem:[%s1346_s27 + $0x48] sm:$0xff] %v908_v44  }
  0xf2   : > { %952 = vst [vmem:[%s1346_s27 + $0x68] sm:$0xff] %v928_v45   ;;  %v465_v50 = vpop.f32.mrf.mxu2  ;;  %v485_v51 = vpop.f32.mrf.mxu3 }
  0xf3   : > { %v427_v54 = vpop.f32.mrf.mxu0  ;;  %v447_v55 = vpop.f32.mrf.mxu1  ;;  %v466_v4 = vadd.f32 %v1333_v27, %v465_v50  ;;  %v486_v5 = vadd.f32 %v1333_v27, %v485_v51 }
  0xf4   : > { %v428_v56 = vadd.f32 %v1333_v27, %v427_v54  ;;  %v448_v57 = vadd.f32 %v1333_v27, %v447_v55 }
  0xf5   : > { %v547_v14 = vadd.f32 %v515_v0, %v466_v4  ;;  %v555_v15 = vadd.f32 %v523_v1, %v486_v5 }
  0xf6   : > { %v532_v62 = vadd.f32 %v500_v52, %v428_v56  ;;  %v540_v63 = vadd.f32 %v508_v53, %v448_v57 }
  0xf8   : > { %v873_v2 = vpack.c.bf16 %v532_v62, %v531_v60  ;;  %v893_v3 = vpack.c.bf16 %v540_v63, %v539_v61 }
  0xfa   : > { %941 = vst [vmem:[%s1346_s27 + $0x10] sm:$0xff] %v873_v2   ;;  %v467_v8 = vpop.f32.mrf.mxu2  ;;  %v487_v9 = vpop.f32.mrf.mxu3 }
  0xfb   : > { %945 = vst [vmem:[%s1346_s27 + $0x30] sm:$0xff] %v893_v3   ;;  %v468_v10 = vadd.f32 %v1333_v27, %v467_v8  ;;  %v488_v11 = vadd.f32 %v1333_v27, %v487_v9  ;;  %v430_v12 = vpop.f32.mrf.mxu0  ;;  %v450_v13 = vpop.f32.mrf.mxu1 }
  0xfc   : > { %v431_v24 = vadd.f32 %v1333_v27, %v430_v12  ;;  %v451_v25 = vadd.f32 %v1333_v27, %v450_v13 }
  0xfd   : > { %v548_v16 = vadd.f32 %v516_v6, %v468_v10  ;;  %v556_v17 = vadd.f32 %v524_v7, %v488_v11 }
  0xfe   : > { %v533_v37 = vadd.f32 %v501_v22, %v431_v24  ;;  %v541_v38 = vadd.f32 %v509_v23, %v451_v25 }
  0xff   : > { %v913_v20 = vpack.c.bf16 %v548_v16, %v547_v14  ;;  %v933_v21 = vpack.c.bf16 %v556_v17, %v555_v15 }
 0x101   : > { %949 = vst [vmem:[%s1346_s27 + $0x50] sm:$0xff] %v913_v20  }
 0x102   : > { %953 = vst [vmem:[%s1346_s27 + $0x70] sm:$0xff] %v933_v21   ;;  %v470_v26 = vpop.f32.mrf.mxu2  ;;  %v490_v28 = vpop.f32.mrf.mxu3 }
 0x103   : > { %v432_v31 = vpop.f32.mrf.mxu0  ;;  %v452_v32 = vpop.f32.mrf.mxu1  ;;  %v471_v45 = vadd.f32 %v1333_v27, %v470_v26  ;;  %v491_v46 = vadd.f32 %v1333_v27, %v490_v28 }
 0x104   : > { %v433_v33 = vadd.f32 %v1333_v27, %v432_v31  ;;  %v453_v34 = vadd.f32 %v1333_v27, %v452_v32 }
 0x105   : > { %v549_v53 = vadd.f32 %v517_v41, %v471_v45  ;;  %v557_v54 = vadd.f32 %v525_v42, %v491_v46 }
 0x106   : > { %v534_v39 = vadd.f32 %v502_v29, %v433_v33  ;;  %v542_v40 = vadd.f32 %v510_v30, %v453_v34 }
 0x108   : > { %v878_v43 = vpack.c.bf16 %v534_v39, %v533_v37  ;;  %v898_v44 = vpack.c.bf16 %v542_v40, %v541_v38 }
 0x10a   : > { %942 = vst [vmem:[%s1346_s27 + $0x18] sm:$0xff] %v878_v43   ;;  %v472_v49 = vpop.f32.mrf.mxu2  ;;  %v492_v50 = vpop.f32.mrf.mxu3 }
 0x10b   : > { %946 = vst [vmem:[%s1346_s27 + $0x38] sm:$0xff] %v898_v44   ;;  %v473_v51 = vadd.f32 %v1333_v27, %v472_v49  ;;  %v493_v52 = vadd.f32 %v1333_v27, %v492_v50 }
 0x10d   : > { %v550_v55 = vadd.f32 %v518_v47, %v473_v51  ;;  %v558_v56 = vadd.f32 %v526_v48, %v493_v52 }
 0x10f   : > { %v918_v57 = vpack.c.bf16 %v550_v55, %v549_v53  ;;  %v938_v58 = vpack.c.bf16 %v558_v56, %v557_v54 }
 0x111   : > { %950 = vst [vmem:[%s1346_s27 + $0x58] sm:$0xff] %v918_v57  }
 0x112   : > { %954 = vst [vmem:[%s1346_s27 + $0x78] sm:$0xff] %v938_v58  }
 0x113   : > { %1128 = shalt.err (!%p1125_p10)
}
 0x114   : > { %s1176_s6 = smov 64   ;;  %s1177_s25 = smov 4  }
 0x115   : > { %985 = dma.vmem_to_hbm [thread:$0]  (%p1267_p3), %s637_s16, 2048, %s639_s24, %s624_s29, %s1176_s6, %s1176_s6, %s1177_s25  }
 0x116 PF: > { %s653_s18 = sand.u32 1, %s1159_s12   ;;  %p1445_p12 = scmp.ge.s32.totalorder %s1171_s15, 2 }
 0x117   : > { %s654_s23 = scalar_lea.sflag [#allocation4], %s653_s18 }
 0x118   : > { %p996_p13 = pnand %p1445_p12, %p1233_p6 }
 0x11a   : > { %p997_p0 = pneg %p996_p13 }
 0x11c   : > { %1154 = dma.done.wait (%p997_p0), %s654_s23, 2048  }
 0x11d   : > { %1156 = vsyncadd (%p997_p0), %s654_s23, 4294965248  ;;  %p17_p5 = scmp.ge.s32.totalorder %s1251_s26, 4   ;;  %s1446_s12 = smov %s1163_s13 }
 0x11e   : > { %s1447_s13 = smov %s1167_s14  ;;  %s1448_s14 = smov %s1263_s4 }
 0x11f   : > { %s1449_s15 = smov %s1251_s26  ;;  %19 = sbr.rel (!%p17_p5) target bundleno = 6 (0x6), region = 81 }
 0x124   :  { %660 = vsyncpa [#allocation3], 1 }
 0x125   :  { %662 = vsyncpa [#allocation3 + $0x1], 1 }
 0x126   :  { %663 = vsyncpa [#allocation6], 1 }
 0x127   :  { %664 = vsyncpa [#allocation4], 1 }
 0x128   :  { %666 = vsyncpa [#allocation4 + $0x1], 1 }

</bundles_post_ra>
